<compile_context>
chip_gen: v7x
topology: tpu7x:2x2x1
jax: 0.10.0
libtpu: 0.0.40
codegen_flags: <defaults>
</compile_context>

<pallas_src>
import jax
import jax.numpy as jnp
from jax.experimental import pallas as pl
from jax.experimental.pallas import tpu as pltpu

GROUP = 32  # samples packed per lane-row (32 * latent_dim(4) = 128 lanes)


def decoder_kernel(z_ref, w1_ref, b1_ref, w2_ref, b2_ref, out_ref):
    # Cast z to the matmul dtype in-kernel (cheap VPU pass, avoids an extra
    # XLA convert + HBM round trip in the wrapper).
    zc = z_ref[...].astype(w1_ref.dtype)
    # fc1 (block-diagonal expanded): (T, 128) @ (128, 640) -> (T, 640)
    h = jnp.dot(zc, w1_ref[...], preferred_element_type=jnp.float32)
    h = jnp.maximum(h + b1_ref[...], 0.0)          # bias + ReLU in f32 (VPU)
    # fc2: (T, 640) @ (640, 64) -> (T, 64)
    o = jnp.dot(h.astype(w2_ref.dtype), w2_ref[...],
                preferred_element_type=jnp.float32)
    out_ref[...] = (o + b2_ref[...]).astype(out_ref.dtype)


def decoder_forward(z, w1, b1, w2, b2, *, tile_m=65536,
                    compute_dtype=jnp.bfloat16):
    """z: (batch, seq, latent) f32; weights in PyTorch layout:
    w1 (nhidden, latent), b1 (nhidden,), w2 (obs, nhidden), b2 (obs,).
    Returns (batch, seq, obs) f32."""
    batch, seq, latent_dim = z.shape
    nhidden = w1.shape[0]
    obs_dim = w2.shape[0]
    M = batch * seq

    # Pad rows to a multiple of GROUP*8 so the packed view has whole sublane
    # groups.  (Only materializes a copy when M is not already aligned.)
    m_pad = pl.cdiv(M, GROUP * 8) * (GROUP * 8)
    z2 = z.reshape(M, latent_dim)
    if m_pad != M:
        z2 = jnp.pad(z2, ((0, m_pad - M), (0, 0)))
    rows = m_pad // GROUP
    # Layout-preserving reshape (no data movement): (m_pad, L) -> (rows, G*L)
    zp = z2.reshape(rows, GROUP * latent_dim)

    # Block-diagonal expanded weights (tiny; precompute once in production).
    eye = jnp.eye(GROUP, dtype=jnp.float32)
    w1e = jnp.kron(eye, w1.T).astype(compute_dtype)          # (G*L, G*H)
    w2e = jnp.kron(eye, w2.T).astype(compute_dtype)          # (G*H, G*O)
    b1e = jnp.tile(b1, GROUP).reshape(1, GROUP * nhidden).astype(jnp.float32)
    b2e = jnp.tile(b2, GROUP).reshape(1, GROUP * obs_dim).astype(jnp.float32)

    # Tile selection: large tiles to amortize per-step overhead, but always
    # >= 2 grid steps (when possible) so v7x megacore shards the grid.
    tr_req = max(8, (tile_m // GROUP) // 8 * 8)
    if rows > tr_req:
        tile_rows = tr_req
    elif rows >= 16:
        tile_rows = pl.cdiv(pl.cdiv(rows, 2), 8) * 8
    else:
        tile_rows = rows
    grid = (pl.cdiv(rows, tile_rows),)

    lanes_in = GROUP * latent_dim
    lanes_hid = GROUP * nhidden
    lanes_out = GROUP * obs_dim

    out_p = pl.pallas_call(
        decoder_kernel,
        out_shape=jax.ShapeDtypeStruct((rows, lanes_out), jnp.float32),
        grid_spec=pltpu.PrefetchScalarGridSpec(
            num_scalar_prefetch=0,
            grid=grid,
            in_specs=[
                # streaming packed-z tile: lane-dense (128 lanes)
                pl.BlockSpec((tile_rows, lanes_in), lambda i: (i, 0)),
                # weights / biases: constant block index -> VMEM-resident
                pl.BlockSpec((lanes_in, lanes_hid), lambda i: (0, 0)),
                pl.BlockSpec((1, lanes_hid), lambda i: (0, 0)),
                pl.BlockSpec((lanes_hid, lanes_out), lambda i: (0, 0)),
                pl.BlockSpec((1, lanes_out), lambda i: (0, 0)),
            ],
            out_specs=pl.BlockSpec((tile_rows, lanes_out), lambda i: (i, 0)),
        ),
        compiler_params=pltpu.CompilerParams(
            dimension_semantics=("parallel",),
            vmem_limit_bytes=32 * 1024 * 1024,
        ),
    )(zp, w1e, b1e, w2e, b2e)

    # Layout-preserving reshape back: (rows, G*O) -> (m_pad, O)
    out = out_p.reshape(m_pad, obs_dim)
    if m_pad != M:
        out = out[:M]
    return out.reshape(batch, seq, obs_dim)


def init_params(key, latent_dim=4, obs_dim=2, nhidden=20):
    """Deterministic init mirroring nn.Linear's U(-1/sqrt(fan_in), 1/sqrt(fan_in)),
    stored in PyTorch (out_features, in_features) layout."""
    k1, k2, k3, k4 = jax.random.split(key, 4)
    lim1 = 1.0 / jnp.sqrt(jnp.float32(latent_dim))
    lim2 = 1.0 / jnp.sqrt(jnp.float32(nhidden))
    w1 = jax.random.uniform(k1, (nhidden, latent_dim), jnp.float32, -lim1, lim1)
    b1 = jax.random.uniform(k2, (nhidden,), jnp.float32, -lim1, lim1)
    w2 = jax.random.uniform(k3, (obs_dim, nhidden), jnp.float32, -lim2, lim2)
    b2 = jax.random.uniform(k4, (obs_dim,), jnp.float32, -lim2, lim2)
    return w1, b1, w2, b2


if __name__ == "__main__":
    latent_dim, obs_dim, nhidden = 4, 2, 20

    key = jax.random.PRNGKey(0)
    k_z, k_p, k_z2 = jax.random.split(key, 3)
    w1, b1, w2, b2 = init_params(k_p, latent_dim, obs_dim, nhidden)

    # Small shape implied by the module.
    batch, seq = 2, 8
    z = jax.random.normal(k_z, (batch, seq, latent_dim), jnp.float32)
    ref = jnp.maximum(z @ w1.T + b1, 0.0) @ w2.T + b2

    # Exact-arithmetic path (f32 operands): tight check.
    out_f32 = jax.block_until_ready(
        decoder_forward(z, w1, b1, w2, b2, compute_dtype=jnp.float32))
    assert out_f32.shape == (batch, seq, obs_dim)
    assert jnp.allclose(out_f32, ref, atol=1e-5, rtol=1e-5)

    # Default (bf16 matmul operands) path: loose check.
    out_bf16 = jax.block_until_ready(decoder_forward(z, w1, b1, w2, b2))
    assert jnp.allclose(out_bf16, ref, atol=5e-2, rtol=5e-2)

    # Larger shape exercising the multi-step (megacore-friendly) grid with no
    # padding copies (M multiple of 256).
    batch2, seq2 = 4, 512
    z2 = jax.random.normal(k_z2, (batch2, seq2, latent_dim), jnp.float32)
    ref2 = jnp.maximum(z2 @ w1.T + b1, 0.0) @ w2.T + b2
    out2 = jax.block_until_ready(decoder_forward(z2, w1, b1, w2, b2))
    assert out2.shape == (batch2, seq2, obs_dim)
    assert jnp.allclose(out2, ref2, atol=5e-2, rtol=5e-2)

    print("KERNEL_OK")
</pallas_src>

<mosaic_0001>
module attributes {stable_mosaic.version = 11 : i64} {
  func.func @decoder_kernel(%arg0: i32, %arg1: memref<8x128xf32, #tpu.memory_space<vmem>>, %arg2: memref<128x640xf32, #tpu.memory_space<vmem>>, %arg3: memref<1x640xf32, #tpu.memory_space<vmem>>, %arg4: memref<640x64xf32, #tpu.memory_space<vmem>>, %arg5: memref<1x64xf32, #tpu.memory_space<vmem>>, %arg6: memref<8x64xf32, #tpu.memory_space<vmem>>) attributes {dimension_semantics = [#tpu.dimension_semantics<parallel>], iteration_bounds = array<i64: 1>, scalar_prefetch = 0 : i64, scratch_operands = 0 : i64, tpu.core_type = #tpu.core_type<tc>, window_params = [{transform_indices = @transform_0, window_bounds = array<i64: 8, 128>}, {pipeline_mode = #tpu.pipeline_mode<synchronous>, transform_indices = @transform_1, window_bounds = array<i64: 128, 640>}, {pipeline_mode = #tpu.pipeline_mode<synchronous>, transform_indices = @transform_2, window_bounds = array<i64: 1, 640>}, {pipeline_mode = #tpu.pipeline_mode<synchronous>, transform_indices = @transform_3, window_bounds = array<i64: 640, 64>}, {pipeline_mode = #tpu.pipeline_mode<synchronous>, transform_indices = @transform_4, window_bounds = array<i64: 1, 64>}, {transform_indices = @transform_5, window_bounds = array<i64: 8, 64>}]} {
    %c0 = arith.constant 0 : index
    %c0_0 = arith.constant 0 : index
    %0 = vector.load %arg1[%c0, %c0_0] : memref<8x128xf32, #tpu.memory_space<vmem>>, vector<8x128xf32>
    %c0_1 = arith.constant 0 : index
    %c0_2 = arith.constant 0 : index
    %1 = vector.load %arg2[%c0_1, %c0_2] : memref<128x640xf32, #tpu.memory_space<vmem>>, vector<128x640xf32>
    %cst = arith.constant dense<0.000000e+00> : vector<8x640xf32>
    %2 = tpu.matmul %0, %1, %cst {dimension_numbers = #tpu.dot_dimension_numbers<[1], [0], [0], [1], [0, 0, 1, 1], [], []>} : vector<8x128xf32>, vector<128x640xf32>, vector<8x640xf32> -> vector<8x640xf32>
    %c0_3 = arith.constant 0 : index
    %c0_4 = arith.constant 0 : index
    %3 = vector.load %arg3[%c0_3, %c0_4] : memref<1x640xf32, #tpu.memory_space<vmem>>, vector<1x640xf32>
    %4 = vector.broadcast %3 : vector<1x640xf32> to vector<8x640xf32>
    %5 = arith.addf %2, %4 : vector<8x640xf32>
    %cst_5 = arith.constant 0.000000e+00 : f32
    %6 = vector.broadcast %cst_5 : f32 to vector<8x640xf32>
    %7 = arith.maximumf %5, %6 : vector<8x640xf32>
    %c0_6 = arith.constant 0 : index
    %c0_7 = arith.constant 0 : index
    %8 = vector.load %arg4[%c0_6, %c0_7] : memref<640x64xf32, #tpu.memory_space<vmem>>, vector<640x64xf32>
    %cst_8 = arith.constant dense<0.000000e+00> : vector<8x64xf32>
    %9 = tpu.matmul %7, %8, %cst_8 {dimension_numbers = #tpu.dot_dimension_numbers<[1], [0], [0], [1], [0, 0, 1, 1], [], []>} : vector<8x640xf32>, vector<640x64xf32>, vector<8x64xf32> -> vector<8x64xf32>
    %c0_9 = arith.constant 0 : index
    %c0_10 = arith.constant 0 : index
    %10 = vector.load %arg5[%c0_9, %c0_10] : memref<1x64xf32, #tpu.memory_space<vmem>>, vector<1x64xf32>
    %11 = vector.broadcast %10 : vector<1x64xf32> to vector<8x64xf32>
    %12 = arith.addf %9, %11 : vector<8x64xf32>
    %c0_11 = arith.constant 0 : index
    %c0_12 = arith.constant 0 : index
    %13 = vector.load %arg6[%c0_11, %c0_12] : memref<8x64xf32, #tpu.memory_space<vmem>>, vector<8x64xf32>
    tpu.vector_store %arg6[%c0_11, %c0_12], %12 {strides = array<i32>} : memref<8x64xf32, #tpu.memory_space<vmem>>, vector<8x64xf32>,
    return
  }
  func.func @transform_0(%arg0: i32) -> (i32, i32) {
    %c0_i32 = arith.constant 0 : i32
    %c0_i32_0 = arith.constant 0 : i32
    return %arg0, %c0_i32 : i32, i32
  }
  func.func @transform_1(%arg0: i32) -> (i32, i32) {
    %c0_i32 = arith.constant 0 : i32
    %c0_i32_0 = arith.constant 0 : i32
    %c0_i32_1 = arith.constant 0 : i32
    return %c0_i32, %c0_i32_0 : i32, i32
  }
  func.func @transform_2(%arg0: i32) -> (i32, i32) {
    %c0_i32 = arith.constant 0 : i32
    %c0_i32_0 = arith.constant 0 : i32
    %c0_i32_1 = arith.constant 0 : i32
    return %c0_i32, %c0_i32_0 : i32, i32
  }
  func.func @transform_3(%arg0: i32) -> (i32, i32) {
    %c0_i32 = arith.constant 0 : i32
    %c0_i32_0 = arith.constant 0 : i32
    %c0_i32_1 = arith.constant 0 : i32
    return %c0_i32, %c0_i32_0 : i32, i32
  }
  func.func @transform_4(%arg0: i32) -> (i32, i32) {
    %c0_i32 = arith.constant 0 : i32
    %c0_i32_0 = arith.constant 0 : i32
    %c0_i32_1 = arith.constant 0 : i32
    return %c0_i32, %c0_i32_0 : i32, i32
  }
  func.func @transform_5(%arg0: i32) -> (i32, i32) {
    %c0_i32 = arith.constant 0 : i32
    %c0_i32_0 = arith.constant 0 : i32
    return %arg0, %c0_i32 : i32, i32
  }
}

</mosaic_0001>

<bundles_post_ra>
// kernel: tpu_custom_call.1
= control target key start
LH: loop header
LB: loop body
LE: loop exit
PB: predicated region body
PF: predicated region fallthrough
CT: control target
= control target key end

     0   :  { %v1038_v7 = vmov 0.0   ;;  %vm1040_vm0 = vmmov 0   ;;  %s1600_s0 = inlined_call_operand.vmem [shape: f32[8,128], index: 0, kind: input, shape index: {}]   ;;  %s1601_s1 = inlined_call_operand.vmem [shape: f32[128,640], index: 1, kind: input, shape index: {}]   ;;  %s1602_s2 = inlined_call_operand.vmem [shape: f32[1,640], index: 2, kind: input, shape index: {}]   ;;  %s1603_s3 = inlined_call_operand.vmem [shape: f32[640,64], index: 3, kind: input, shape index: {}]   ;;  %s1604_s4 = inlined_call_operand.vmem [shape: f32[1,64], index: 4, kind: input, shape index: {}]   ;;  %s1605_s5 = inlined_call_operand.hbm [shape: f32[8,64], index: 5, kind: output, shape index: {}]  }
   0x1   :  { %v23_v0 = vld [vmem:[%s1601_s1 + $0x8] sm:$0xff]  ;;  %v28_v1 = vld [vmem:[%s1601_s1 + $0x30] sm:$0xff]  ;;  %v22_v2 = vld [vmem:[%s1601_s1] sm:$0xff]  ;;  %193 = vmatprep.mubr.f32.mxu0 %v1038_v7  ;;  %264 = vmatprep.mubr.f32.mxu1 %v1038_v7 }
   0x2   :  { %v834_v3 = vpack.c.bf16 %v28_v1, %v23_v0  ;;  %v27_v4 = vld [vmem:[%s1601_s1 + $0x28] sm:$0xff]  ;;  %v25_v5 = vld [vmem:[%s1601_s1 + $0x18] sm:$0xff]  ;;  %v30_v6 = vld [vmem:[%s1601_s1 + $0x40] sm:$0xff] }
   0x3   :  { %v836_v8 = vpack.c.bf16 %v27_v4, %v22_v2  ;;  %v866_v9 = vpack.c.bf16 %v30_v6, %v25_v5  ;;  %v24_v10 = vld [vmem:[%s1601_s1 + $0x10] sm:$0xff]  ;;  %v29_v11 = vld [vmem:[%s1601_s1 + $0x38] sm:$0xff]  ;;  %v38_v14 = vld [vmem:[%s1601_s1 + $0x80] sm:$0xff] }
   0x4   :  { %v33_v12 = vld [vmem:[%s1601_s1 + $0x58] sm:$0xff]  ;;  %835 = vmatprep.subr.bf16.mxu0 %v834_v3  ;;  %v868_v13 = vpack.c.bf16 %v29_v11, %v24_v10  ;;  %v32_v15 = vld [vmem:[%s1601_s1 + $0x50] sm:$0xff]  ;;  %v35_v19 = vld [vmem:[%s1601_s1 + $0x68] sm:$0xff] }
   0x5   :  { %v37_v16 = vld [vmem:[%s1601_s1 + $0x78] sm:$0xff]  ;;  %837 = vmatpush1.bf16.msra.mxu0 %v836_v8  ;;  %867 = vmatprep.subr.bf16.mxu1 %v866_v9  ;;  %v838_v17 = vpack.c.bf16 %v38_v14, %v33_v12  ;;  %v40_v20 = vld [vmem:[%s1601_s1 + $0x90] sm:$0xff]  ;;  %v34_v21 = vld [vmem:[%s1601_s1 + $0x60] sm:$0xff] }
   0x6   :  { %v840_v18 = vpack.c.bf16 %v37_v16, %v32_v15  ;;  %869 = vmatpush1.bf16.msra.mxu1 %v868_v13  ;;  %v870_v22 = vpack.c.bf16 %v40_v20, %v35_v19  ;;  %v39_v23 = vld [vmem:[%s1601_s1 + $0x88] sm:$0xff]  ;;  %v48_v25 = vld [vmem:[%s1601_s1 + $0xd0] sm:$0xff]  ;;  %v42_v28 = vld [vmem:[%s1601_s1 + $0xa0] sm:$0xff] }
   0x7   :  { %v43_v24 = vld [vmem:[%s1601_s1 + $0xa8] sm:$0xff]  ;;  %839 = vmatprep.subr.bf16.mxu0 %v838_v17  ;;  %v872_v26 = vpack.c.bf16 %v39_v23, %v34_v21  ;;  %v45_v30 = vld [vmem:[%s1601_s1 + $0xb8] sm:$0xff]  ;;  %v50_v31 = vld [vmem:[%s1601_s1 + $0xe0] sm:$0xff] }
   0x8   :  { %v842_v27 = vpack.c.bf16 %v48_v25, %v43_v24  ;;  %v47_v29 = vld [vmem:[%s1601_s1 + $0xc8] sm:$0xff]  ;;  %871 = vmatprep.subr.bf16.mxu1 %v870_v22  ;;  %v44_v32 = vld [vmem:[%s1601_s1 + $0xb0] sm:$0xff]  ;;  %v49_v33 = vld [vmem:[%s1601_s1 + $0xd8] sm:$0xff]  ;;  %v874_v35 = vpack.c.bf16 %v50_v31, %v45_v30 }
   0x9   :  { %841 = vmatpush1.bf16.msra.mxu0 %v840_v18  ;;  %v844_v34 = vpack.c.bf16 %v47_v29, %v42_v28  ;;  %v53_v36 = vld [vmem:[%s1601_s1 + $0xf8] sm:$0xff]  ;;  %v58_v37 = vld [vmem:[%s1601_s1 + $0x120] sm:$0xff]  ;;  %v52_v38 = vld [vmem:[%s1601_s1 + $0xf0] sm:$0xff]  ;;  %v876_v39 = vpack.c.bf16 %v49_v33, %v44_v32 }
   0xa   :  { %873 = vmatpush1.bf16.msra.mxu1 %v872_v26  ;;  %843 = vmatprep.subr.bf16.mxu0 %v842_v27  ;;  %v846_v40 = vpack.c.bf16 %v58_v37, %v53_v36  ;;  %v57_v41 = vld [vmem:[%s1601_s1 + $0x118] sm:$0xff]  ;;  %v55_v42 = vld [vmem:[%s1601_s1 + $0x108] sm:$0xff]  ;;  %v60_v43 = vld [vmem:[%s1601_s1 + $0x130] sm:$0xff] }
   0xb   :  { %875 = vmatprep.subr.bf16.mxu1 %v874_v35  ;;  %v878_v44 = vpack.c.bf16 %v60_v43, %v55_v42  ;;  %v54_v45 = vld [vmem:[%s1601_s1 + $0x100] sm:$0xff]  ;;  %v59_v46 = vld [vmem:[%s1601_s1 + $0x128] sm:$0xff]  ;;  %v68_v48 = vld [vmem:[%s1601_s1 + $0x170] sm:$0xff]  ;;  %v848_v49 = vpack.c.bf16 %v57_v41, %v52_v38 }
   0xc   :  { %v63_v47 = vld [vmem:[%s1601_s1 + $0x148] sm:$0xff]  ;;  %v65_v50 = vld [vmem:[%s1601_s1 + $0x158] sm:$0xff]  ;;  %v70_v51 = vld [vmem:[%s1601_s1 + $0x180] sm:$0xff]  ;;  %v880_v52 = vpack.c.bf16 %v59_v46, %v54_v45  ;;  %v1039_v45 = vmov 0.0|0.0  }
   0xd   :  { %845 = vmatpush1.bf16.msra.mxu0 %v844_v34  ;;  %v850_v53 = vpack.c.bf16 %v68_v48, %v63_v47  ;;  %v62_v54 = vld [vmem:[%s1601_s1 + $0x140] sm:$0xff]  ;;  %v67_v55 = vld [vmem:[%s1601_s1 + $0x168] sm:$0xff]  ;;  %v64_v56 = vld [vmem:[%s1601_s1 + $0x150] sm:$0xff]  ;;  %v882_v57 = vpack.c.bf16 %v70_v51, %v65_v50 }
   0xe   :  { %877 = vmatpush1.bf16.msra.mxu1 %v876_v39  ;;  %847 = vmatprep.subr.bf16.mxu0 %v846_v40  ;;  %v69_v58 = vld [vmem:[%s1601_s1 + $0x178] sm:$0xff]  ;;  %v78_v60 = vld [vmem:[%s1601_s1 + $0x1c0] sm:$0xff]  ;;  %v75_v61 = vld [vmem:[%s1601_s1 + $0x1a8] sm:$0xff]  ;;  %v852_v63 = vpack.c.bf16 %v67_v55, %v62_v54 }
   0xf   :  { %879 = vmatprep.subr.bf16.mxu1 %v878_v44  ;;  %v73_v59 = vld [vmem:[%s1601_s1 + $0x198] sm:$0xff]  ;;  %v80_v62 = vld [vmem:[%s1601_s1 + $0x1d0] sm:$0xff]  ;;  %v884_v0 = vpack.c.bf16 %v69_v58, %v64_v56  ;;  %v74_v4 = vld [vmem:[%s1601_s1 + $0x1a0] sm:$0xff] }
  0x10   :  { %v854_v1 = vpack.c.bf16 %v78_v60, %v73_v59  ;;  %v72_v2 = vld [vmem:[%s1601_s1 + $0x190] sm:$0xff]  ;;  %v77_v3 = vld [vmem:[%s1601_s1 + $0x1b8] sm:$0xff]  ;;  %v886_v5 = vpack.c.bf16 %v80_v62, %v75_v61  ;;  %v79_v6 = vld [vmem:[%s1601_s1 + $0x1c8] sm:$0xff] }
  0x11   :  { %849 = vmatpush1.bf16.msra.mxu0 %v848_v49  ;;  %v83_v8 = vld [vmem:[%s1601_s1 + $0x1e8] sm:$0xff]  ;;  %v88_v9 = vld [vmem:[%s1601_s1 + $0x210] sm:$0xff]  ;;  %v85_v10 = vld [vmem:[%s1601_s1 + $0x1f8] sm:$0xff]  ;;  %v856_v12 = vpack.c.bf16 %v77_v3, %v72_v2  ;;  %v888_v13 = vpack.c.bf16 %v79_v6, %v74_v4 }
  0x12   :  { %881 = vmatpush1.bf16.msra.mxu1 %v880_v52  ;;  %851 = vmatprep.subr.bf16.mxu0 %v850_v53  ;;  %v90_v11 = vld [vmem:[%s1601_s1 + $0x220] sm:$0xff]  ;;  %v858_v14 = vpack.c.bf16 %v88_v9, %v83_v8  ;;  %v87_v16 = vld [vmem:[%s1601_s1 + $0x208] sm:$0xff]  ;;  %v84_v17 = vld [vmem:[%s1601_s1 + $0x1f0] sm:$0xff] }
  0x13   :  { %883 = vmatprep.subr.bf16.mxu1 %v882_v57  ;;  %v82_v15 = vld [vmem:[%s1601_s1 + $0x1e0] sm:$0xff]  ;;  %v890_v18 = vpack.c.bf16 %v90_v11, %v85_v10  ;;  %v89_v19 = vld [vmem:[%s1601_s1 + $0x218] sm:$0xff]  ;;  %v95_v22 = vld [vmem:[%s1601_s1 + $0x248] sm:$0xff] }
  0x14   :  { %v93_v20 = vld [vmem:[%s1601_s1 + $0x238] sm:$0xff]  ;;  %v98_v21 = vld [vmem:[%s1601_s1 + $0x260] sm:$0xff]  ;;  %v100_v23 = vld [vmem:[%s1601_s1 + $0x270] sm:$0xff]  ;;  %v860_v24 = vpack.c.bf16 %v87_v16, %v82_v15  ;;  %v892_v25 = vpack.c.bf16 %v89_v19, %v84_v17 }
  0x15   :  { %853 = vmatpush1.bf16.msra.mxu0 %v852_v63  ;;  %v862_v26 = vpack.c.bf16 %v98_v21, %v93_v20  ;;  %v92_v27 = vld [vmem:[%s1601_s1 + $0x230] sm:$0xff]  ;;  %v97_v28 = vld [vmem:[%s1601_s1 + $0x258] sm:$0xff]  ;;  %v894_v29 = vpack.c.bf16 %v100_v23, %v95_v22  ;;  %v94_v30 = vld [vmem:[%s1601_s1 + $0x240] sm:$0xff] }
  0x16   :  { %885 = vmatpush1.bf16.msra.mxu1 %v884_v0  ;;  %855 = vmatprep.subr.bf16.mxu0 %v854_v1  ;;  %v99_v31 = vld [vmem:[%s1601_s1 + $0x268] sm:$0xff]  ;;  %v362_v32 = vld [vmem:[%s1603_s3 + $0x80] sm:$0xff]  ;;  %v864_v34 = vpack.c.bf16 %v97_v28, %v92_v27  ;;  %v364_v43 = vld [vmem:[%s1603_s3 + $0x90] sm:$0xff] }
  0x17   :  { %887 = vmatprep.subr.bf16.mxu1 %v886_v5  ;;  %v363_v33 = vld [vmem:[%s1603_s3 + $0x88] sm:$0xff]  ;;  %v896_v35 = vpack.c.bf16 %v99_v31, %v94_v30  ;;  %v26_v36 = vld [vmem:[%s1601_s1 + $0x20] sm:$0xff]  ;;  %v365_v44 = vld [vmem:[%s1603_s3 + $0x98] sm:$0xff] }
  0x18   :  { %v31_v37 = vld [vmem:[%s1601_s1 + $0x48] sm:$0xff]  ;;  %v922_v38 = vpack.c.bf16 %v363_v33, %v362_v32  ;;  %v346_v39 = vld [vmem:[%s1603_s3] sm:$0xff]  ;;  %v36_v46 = vld [vmem:[%s1601_s1 + $0x70] sm:$0xff]  ;;  %v926_v49 = vpack.c.bf16 %v365_v44, %v364_v43 }
  0x19   :  { %857 = vmatpush1.bf16.msra.mxu0 %v856_v12  ;;  %v347_v40 = vld [vmem:[%s1603_s3 + $0x8] sm:$0xff]  ;;  %v1287_v41 = vld [vmem:[%s1600_s0] sm:$0xff]  ;;  %v899_v42 = vpack.c.bf16 %v31_v37, %v26_v36  ;;  %v41_v47 = vld [vmem:[%s1601_s1 + $0x98] sm:$0xff] }
  0x1a   :  { %889 = vmatpush1.bf16.msra.mxu1 %v888_v13  ;;  %859 = vmatprep.subr.bf16.mxu0 %v858_v14  ;;  %v924_v48 = vpack.c.bf16 %v347_v40, %v346_v39  ;;  %v348_v50 = vld [vmem:[%s1603_s3 + $0x10] sm:$0xff]  ;;  %v349_v51 = vld [vmem:[%s1603_s3 + $0x18] sm:$0xff]  ;;  %v902_v52 = vpack.c.bf16 %v41_v47, %v36_v46  ;;  %v366_v53 = vld [vmem:[%s1603_s3 + $0xa0] sm:$0xff] }
  0x1b   :  { %891 = vmatprep.subr.bf16.mxu1 %v890_v18  ;;  %v367_v54 = vld [vmem:[%s1603_s3 + $0xa8] sm:$0xff]  ;;  %v46_v55 = vld [vmem:[%s1601_s1 + $0xc0] sm:$0xff]  ;;  %v928_v57 = vpack.c.bf16 %v349_v51, %v348_v50  ;;  %v368_v62 = vld [vmem:[%s1603_s3 + $0xb0] sm:$0xff] }
  0x1c   :  { %v51_v56 = vld [vmem:[%s1601_s1 + $0xe8] sm:$0xff]  ;;  %v930_v58 = vpack.c.bf16 %v367_v54, %v366_v53  ;;  %v350_v59 = vld [vmem:[%s1603_s3 + $0x20] sm:$0xff]  ;;  %v369_v63 = vld [vmem:[%s1603_s3 + $0xb8] sm:$0xff] }
  0x1d   :  { %861 = vmatpush1.bf16.msra.mxu0 %v860_v24  ;;  %v351_v60 = vld [vmem:[%s1603_s3 + $0x28] sm:$0xff]  ;;  %v905_v61 = vpack.c.bf16 %v51_v56, %v46_v55  ;;  %v56_v0 = vld [vmem:[%s1601_s1 + $0x110] sm:$0xff]  ;;  %v61_v1 = vld [vmem:[%s1601_s1 + $0x138] sm:$0xff]  ;;  %v934_v3 = vpack.c.bf16 %v369_v63, %v368_v62 }
  0x1e   :  { %893 = vmatpush1.bf16.msra.mxu1 %v892_v25  ;;  %863 = vmatprep.subr.bf16.mxu0 %v862_v26  ;;  %v932_v2 = vpack.c.bf16 %v351_v60, %v350_v59  ;;  %v352_v4 = vld [vmem:[%s1603_s3 + $0x30] sm:$0xff]  ;;  %v353_v5 = vld [vmem:[%s1603_s3 + $0x38] sm:$0xff]  ;;  %v908_v6 = vpack.c.bf16 %v61_v1, %v56_v0  ;;  %v370_v8 = vld [vmem:[%s1603_s3 + $0xc0] sm:$0xff] }
  0x1f   :  { %895 = vmatprep.subr.bf16.mxu1 %v894_v29  ;;  %v371_v9 = vld [vmem:[%s1603_s3 + $0xc8] sm:$0xff] }
  0x21   :  { %865 = vmatpush1.bf16.msra.mxu0 %v864_v34 }
  0x22   :  { %897 = vmatpush1.bf16.msra.mxu1 %v896_v35  ;;  %898 = vmatprep.subr.bf16.mxu0 %v1039_v45 }
  0x23   :  { %923 = vmatprep.subr.bf16.mxu1 %v922_v38 }
  0x24   :  { %194 = vmatmul.mubr.f32.vlgmr.msra.gmra.mrb[0].mxu0 %v1287_v41 }
  0x25   :  { %900 = vmatpush3.bf16.msra.mxu0 %v899_v42  ;;  %265 = vmatmul.mubr.f32.vlgmr.msra.gmra.mrb[0].mxu1 %v1287_v41 }
  0x26   :  { %901 = vmatprep.subr.bf16.mxu0 %v1039_v45  ;;  %796 = vmatprep.mubr.msk.f32.mxu0 %vm1040_vm0, %v1038_v7 }
  0x27   :  { %925 = vmatpush3.bf16.msra.mxu1 %v924_v48 }
  0x28   :  { %927 = vmatprep.subr.bf16.mxu1 %v926_v49 }
  0x29   :  { %903 = vmatpush3.bf16.msra.mxu0 %v902_v52 }
  0x2a   :  { %904 = vmatprep.subr.bf16.mxu0 %v1039_v45 }
  0x2b   :  { %929 = vmatpush3.bf16.msra.mxu1 %v928_v57 }
  0x2c   :  { %931 = vmatprep.subr.bf16.mxu1 %v930_v58 }
  0x2d   :  { %906 = vmatpush3.bf16.msra.mxu0 %v905_v61 }
  0x2e   :  { %10 = vsyncpa [#allocation3], 0  ;;  %907 = vmatprep.subr.bf16.mxu0 %v1039_v45  ;;  %v66_v10 = vld [vmem:[%s1601_s1 + $0x160] sm:$0xff]  ;;  %v71_v11 = vld [vmem:[%s1601_s1 + $0x188] sm:$0xff]  ;;  %v936_v12 = vpack.c.bf16 %v353_v5, %v352_v4  ;;  %v938_v13 = vpack.c.bf16 %v371_v9, %v370_v8  ;;  %vm643_vm1 = vcmask 523264  }
  0x2f   :  { %933 = vmatpush3.bf16.msra.mxu1 %v932_v2  ;;  %v354_v14 = vld [vmem:[%s1603_s3 + $0x40] sm:$0xff]  ;;  %v355_v15 = vld [vmem:[%s1603_s3 + $0x48] sm:$0xff]  ;;  %v911_v16 = vpack.c.bf16 %v71_v11, %v66_v10  ;;  %v372_v17 = vld [vmem:[%s1603_s3 + $0xd0] sm:$0xff] }
  0x30   :  { %935 = vmatprep.subr.bf16.mxu1 %v934_v3  ;;  %v373_v18 = vld [vmem:[%s1603_s3 + $0xd8] sm:$0xff]  ;;  %v76_v19 = vld [vmem:[%s1601_s1 + $0x1b0] sm:$0xff]  ;;  %v940_v21 = vpack.c.bf16 %v355_v15, %v354_v14  ;;  %v374_v26 = vld [vmem:[%s1603_s3 + $0xe0] sm:$0xff] }
  0x31   :  { %909 = vmatpush3.bf16.msra.mxu0 %v908_v6  ;;  %v81_v20 = vld [vmem:[%s1601_s1 + $0x1d8] sm:$0xff]  ;;  %v942_v22 = vpack.c.bf16 %v373_v18, %v372_v17  ;;  %v356_v23 = vld [vmem:[%s1603_s3 + $0x50] sm:$0xff]  ;;  %v375_v27 = vld [vmem:[%s1603_s3 + $0xe8] sm:$0xff] }
  0x32   :  { %910 = vmatprep.subr.bf16.mxu0 %v1039_v45  ;;  %v357_v24 = vld [vmem:[%s1603_s3 + $0x58] sm:$0xff]  ;;  %v914_v25 = vpack.c.bf16 %v81_v20, %v76_v19  ;;  %v86_v28 = vld [vmem:[%s1601_s1 + $0x200] sm:$0xff]  ;;  %v91_v29 = vld [vmem:[%s1601_s1 + $0x228] sm:$0xff]  ;;  %v946_v31 = vpack.c.bf16 %v375_v27, %v374_v26 }
  0x33   :  { %937 = vmatpush3.bf16.msra.mxu1 %v936_v12  ;;  %v944_v30 = vpack.c.bf16 %v357_v24, %v356_v23  ;;  %v358_v32 = vld [vmem:[%s1603_s3 + $0x60] sm:$0xff]  ;;  %v359_v33 = vld [vmem:[%s1603_s3 + $0x68] sm:$0xff]  ;;  %v917_v34 = vpack.c.bf16 %v91_v29, %v86_v28  ;;  %v96_v35 = vld [vmem:[%s1601_s1 + $0x250] sm:$0xff] }
  0x34   :  { %939 = vmatprep.subr.bf16.mxu1 %v938_v13  ;;  %v101_v36 = vld [vmem:[%s1601_s1 + $0x278] sm:$0xff]  ;;  %v394_v37 = vld [vmem:[%s1603_s3 + $0x180] sm:$0xff]  ;;  %v395_v38 = vld [vmem:[%s1603_s3 + $0x188] sm:$0xff]  ;;  %v948_v39 = vpack.c.bf16 %v359_v33, %v358_v32 }
  0x35   :  { %912 = vmatpush3.bf16.msra.mxu0 %v911_v16  ;;  %v920_v40 = vpack.c.bf16 %v101_v36, %v96_v35  ;;  %v954_v42 = vpack.c.bf16 %v395_v38, %v394_v37  ;;  %v378_v43 = vld [vmem:[%s1603_s3 + $0x100] sm:$0xff]  ;;  %v379_v44 = vld [vmem:[%s1603_s3 + $0x108] sm:$0xff]  ;;  %v396_v46 = vld [vmem:[%s1603_s3 + $0x190] sm:$0xff] }
  0x36   :  { %913 = vmatprep.subr.bf16.mxu0 %v1039_v45  ;;  %v397_v47 = vld [vmem:[%s1603_s3 + $0x198] sm:$0xff]  ;;  %v956_v48 = vpack.c.bf16 %v379_v44, %v378_v43  ;;  %v380_v50 = vld [vmem:[%s1603_s3 + $0x110] sm:$0xff]  ;;  %v398_v52 = vld [vmem:[%s1603_s3 + $0x1a0] sm:$0xff] }
  0x37   :  { %941 = vmatpush3.bf16.msra.mxu1 %v940_v21  ;;  %v958_v49 = vpack.c.bf16 %v397_v47, %v396_v46  ;;  %v381_v51 = vld [vmem:[%s1603_s3 + $0x118] sm:$0xff]  ;;  %v399_v53 = vld [vmem:[%s1603_s3 + $0x1a8] sm:$0xff]  ;;  %v382_v56 = vld [vmem:[%s1603_s3 + $0x120] sm:$0xff] }
  0x38   :  { %943 = vmatprep.subr.bf16.mxu1 %v942_v22  ;;  %v960_v54 = vpack.c.bf16 %v381_v51, %v380_v50  ;;  %v962_v55 = vpack.c.bf16 %v399_v53, %v398_v52  ;;  %v383_v57 = vld [vmem:[%s1603_s3 + $0x128] sm:$0xff]  ;;  %v400_v58 = vld [vmem:[%s1603_s3 + $0x1b0] sm:$0xff]  ;;  %v385_v62 = vld [vmem:[%s1603_s3 + $0x138] sm:$0xff] }
  0x39   :  { %915 = vmatpush3.bf16.msra.mxu0 %v914_v25  ;;  %v964_v59 = vpack.c.bf16 %v383_v57, %v382_v56  ;;  %v384_v61 = vld [vmem:[%s1603_s3 + $0x130] sm:$0xff]  ;;  %v402_v63 = vld [vmem:[%s1603_s3 + $0x1c0] sm:$0xff]  ;;  %v403_v0 = vld [vmem:[%s1603_s3 + $0x1c8] sm:$0xff] }
  0x3a   :  { %916 = vmatprep.subr.bf16.mxu0 %v1039_v45  ;;  %v968_v1 = vpack.c.bf16 %v385_v62, %v384_v61  ;;  %v970_v2 = vpack.c.bf16 %v403_v0, %v402_v63  ;;  %v386_v3 = vld [vmem:[%s1603_s3 + $0x140] sm:$0xff]  ;;  %v387_v4 = vld [vmem:[%s1603_s3 + $0x148] sm:$0xff]  ;;  %v404_v5 = vld [vmem:[%s1603_s3 + $0x1d0] sm:$0xff] }
  0x3b   :  { %945 = vmatpush3.bf16.msra.mxu1 %v944_v30  ;;  %v405_v6 = vld [vmem:[%s1603_s3 + $0x1d8] sm:$0xff]  ;;  %v972_v8 = vpack.c.bf16 %v387_v4, %v386_v3  ;;  %v388_v10 = vld [vmem:[%s1603_s3 + $0x150] sm:$0xff]  ;;  %v406_v13 = vld [vmem:[%s1603_s3 + $0x1e0] sm:$0xff] }
  0x3c   :  { %947 = vmatprep.subr.bf16.mxu1 %v946_v31  ;;  %v974_v9 = vpack.c.bf16 %v405_v6, %v404_v5  ;;  %v389_v11 = vld [vmem:[%s1603_s3 + $0x158] sm:$0xff]  ;;  %v407_v14 = vld [vmem:[%s1603_s3 + $0x1e8] sm:$0xff]  ;;  %v376_v16 = vld [vmem:[%s1603_s3 + $0xf0] sm:$0xff]  ;;  %v104_v31 = vlaneseq }
  0x3d   :  { %918 = vmatpush3.bf16.msra.mxu0 %v917_v34  ;;  %v976_v12 = vpack.c.bf16 %v389_v11, %v388_v10  ;;  %v978_v15 = vpack.c.bf16 %v407_v14, %v406_v13  ;;  %v377_v17 = vld [vmem:[%s1603_s3 + $0xf8] sm:$0xff]  ;;  %v390_v18 = vld [vmem:[%s1603_s3 + $0x160] sm:$0xff]  ;;  %v391_v20 = vld [vmem:[%s1603_s3 + $0x168] sm:$0xff] }
  0x3e   :  { %919 = vmatprep.subr.bf16.mxu0 %v1039_v45  ;;  %v950_v19 = vpack.c.bf16 %v377_v17, %v376_v16  ;;  %v360_v21 = vld [vmem:[%s1603_s3 + $0x70] sm:$0xff]  ;;  %v361_v22 = vld [vmem:[%s1603_s3 + $0x78] sm:$0xff]  ;;  %v980_v23 = vpack.c.bf16 %v391_v20, %v390_v18  ;;  %v105_v32 = vshrl.u32 %v104_v31, 7  ;;  %v102_v34 = vld [vmem:[%s1602_s2] sm:$0x1f] }
  0x3f   :  { %949 = vmatpush3.bf16.msra.mxu1 %v948_v39  ;;  %v952_v24 = vpack.c.bf16 %v361_v22, %v360_v21  ;;  %v408_v25 = vld [vmem:[%s1603_s3 + $0x1f0] sm:$0xff]  ;;  %v409_v26 = vld [vmem:[%s1603_s3 + $0x1f8] sm:$0xff]  ;;  %v414_v61 = vld [vmem:[%s1603_s3 + $0x220] sm:$0xff] }
  0x40   :  { %951 = vmatprep.subr.bf16.mxu1 %v950_v19  ;;  %v982_v27 = vpack.c.bf16 %v409_v26, %v408_v25  ;;  %v392_v28 = vld [vmem:[%s1603_s3 + $0x170] sm:$0xff]  ;;  %v393_v29 = vld [vmem:[%s1603_s3 + $0x178] sm:$0xff]  ;;  %v106_v33 = vsub.s32 0, %v105_v32  ;;  %v110_v35 = vsub.s32 1, %v105_v32  ;;  %v114_v36 = vsub.s32 2, %v105_v32  ;;  %v415_v62 = vld [vmem:[%s1603_s3 + $0x228] sm:$0xff] }
  0x41   :  { %921 = vmatpush3.bf16.msra.mxu0 %v920_v40  ;;  %v984_v30 = vpack.c.bf16 %v393_v29, %v392_v28  ;;  %v118_v37 = vsub.s32 3, %v105_v32  ;;  %v993_v63 = vpack.c.bf16 %v415_v62, %v414_v61  ;;  %v416_v0 = vld [vmem:[%s1603_s3 + $0x230] sm:$0xff]  ;;  %v419_v3 = vld [vmem:[%s1603_s3 + $0x248] sm:$0xff]  ;;  %v421_v6 = vld [vmem:[%s1603_s3 + $0x258] sm:$0xff]  ;;  %v122_v11 = vsub.s32 4, %v105_v32 }
  0x42   :  { %955 = vmatprep.subr.bf16.mxu0 %v954_v42  ;;  %v107_v38 = vrot.slane %v102_v34, %v106_v33  ;;  %v111_v39 = vrot.slane %v102_v34, %v110_v35  ;;  %v115_v40 = vrot.slane %v102_v34, %v114_v36  ;;  %v420_v5 = vld [vmem:[%s1603_s3 + $0x250] sm:$0xff]  ;;  %v423_v10 = vld [vmem:[%s1603_s3 + $0x268] sm:$0xff]  ;;  %v659_v22 = vld [vmem:[%s1604_s4] ss:$0 sm:$0xff] }
  0x43   :  { %953 = vmatpush3.bf16.msra.mxu1 %v952_v24  ;;  %v119_v42 = vrot.slane %v102_v34, %v118_v37  ;;  %v123_v13 = vrot.slane %v102_v34, %v122_v11  ;;  %v424_v14 = vld [vmem:[%s1603_s3 + $0x270] sm:$0xff] }
  0x44   :  { %797 = vmatmul.mubr.f32.vlgmr.msra.gmra.mrb[2].mxu0 %v1287_v41  ;;  %v401_v41 = vld [vmem:[%s1603_s3 + $0x1b8] sm:$0xff]  ;;  %986 = vmatprep.subr.bf16.mxu1 %v1039_v45 }
  0x45   :  { %957 = vmatpush3.bf16.msra.mxu0 %v956_v48  ;;  %v966_v60 = vpack.c.bf16 %v401_v41, %v400_v58  ;;  %v410_v48 = vld [vmem:[%s1603_s3 + $0x200] sm:$0xff]  ;;  %v412_v41 = vld [vmem:[%s1603_s3 + $0x210] sm:$0xff] }
  0x46   :  { %959 = vmatprep.subr.bf16.mxu0 %v958_v49  ;;  %v411_v49 = vld [vmem:[%s1603_s3 + $0x208] sm:$0xff] }
  0x47   :  { %v987_v56 = vpack.c.bf16 %v411_v49, %v410_v48 }
  0x49   :  { %961 = vmatpush3.bf16.msra.mxu0 %v960_v54 }
  0x4a   :  { %963 = vmatprep.subr.bf16.mxu0 %v962_v55 }
  0x4d   :  { %965 = vmatpush3.bf16.msra.mxu0 %v964_v59  ;;  %v413_v59 = vld [vmem:[%s1603_s3 + $0x218] sm:$0xff] }
  0x4e   :  { %967 = vmatprep.subr.bf16.mxu0 %v966_v60  ;;  %v990_v60 = vpack.c.bf16 %v413_v59, %v412_v41 }
  0x51   :  { %969 = vmatpush3.bf16.msra.mxu0 %v968_v1  ;;  %v417_v1 = vld [vmem:[%s1603_s3 + $0x238] sm:$0xff] }
  0x52   :  { %971 = vmatprep.subr.bf16.mxu0 %v970_v2  ;;  %v996_v2 = vpack.c.bf16 %v417_v1, %v416_v0 }
  0x55   :  { %973 = vmatpush3.bf16.msra.mxu0 %v972_v8  ;;  %v1002_v8 = vpack.c.bf16 %v421_v6, %v420_v5 }
  0x56   :  { %975 = vmatprep.subr.bf16.mxu0 %v974_v9  ;;  %v422_v9 = vld [vmem:[%s1603_s3 + $0x260] sm:$0xff] }
  0x59   :  { %977 = vmatpush3.bf16.msra.mxu0 %v976_v12  ;;  %v1005_v12 = vpack.c.bf16 %v423_v10, %v422_v9 }
  0x5a   :  { %979 = vmatprep.subr.bf16.mxu0 %v978_v15  ;;  %v425_v15 = vld [vmem:[%s1603_s3 + $0x278] sm:$0xff] }
  0x5b   :  { %v1008_v17 = vpack.c.bf16 %v425_v15, %v424_v14 }
  0x5d   :  { %981 = vmatpush3.bf16.msra.mxu0 %v980_v23 }
  0x5e   :  { %983 = vmatprep.subr.bf16.mxu0 %v982_v27 }
  0x61   :  { %985 = vmatpush3.bf16.msra.mxu0 %v984_v30 }
  0xf7   :  { %v195_v43 = vpop.f32.mrb[0].mxu0 }
  0xf8   :  { %v196_v44 = vadd.f32 %v195_v43, %v107_v38  ;;  %v197_v46 = vpop.f32.mrb[1].mxu0  ;;  %v266_v47 = vpop.f32.mrb[0].mxu1 }
  0xf9   :  { %v198_v50 = vadd.f32 %v197_v46, %v111_v39  ;;  %v267_v51 = vadd.f32 %v266_v47, %v115_v40  ;;  %v268_v52 = vpop.f32.mrb[1].mxu1 }
  0xfa   :  { %v269_v53 = vadd.f32 %v268_v52, %v119_v42  ;;  %v341_v57 = vmax.f32 %v196_v44, 0.0 }
  0xfb   :  { %v342_v54 = vmax.f32 %v198_v50, 0.0  ;;  %v343_v55 = vmax.f32 %v267_v51, 0.0 }
  0xfc   :  { %v344_v58 = vmax.f32 %v269_v53, 0.0 }
  0xfd   :  { %497 = vmatprep.mubr.f32.mxu1 %v342_v54 }
  0xfe   :  { %498 = vmatmul.mubr.f32.vlgmr.msra.gmra.mrb[2].mxu1 %v341_v57  ;;  %567 = vmatprep.mubr.f32.mxu0 %v344_v58 }
  0xff   :  { %988 = vmatpush3.bf16.msra.mxu1 %v987_v56  ;;  %568 = vmatmul.mubr.f32.vlgmr.msra.gmra.mrb[4].mxu0 %v343_v55 }
 0x100   :  { %989 = vmatprep.subr.bf16.mxu1 %v1039_v45  ;;  %831 = vmatprep.mubr.msk.f32.mxu1 %vm1040_vm0, %v1038_v7  ;;  %v418_v7 = vld [vmem:[%s1603_s3 + $0x240] sm:$0xff]  ;;  %s1041_s3 = smov [#allocation2]  }
 0x101   :  { %v999_v4 = vpack.c.bf16 %v419_v3, %v418_v7  ;;  %s651_s6 = sshll.u32 %s1041_s3, 4  ;;  %s652_s6 = int_to_ptr.vmem [resolvable:$true] %s651_s6 }
 0x102   :  { %s1014_s7 = scalar_lea.vmem %s652_s6, 128  ;;  %p1019_p1 = scmp.lt.s32.totalorder %s652_s6, %s652_s6 }
 0x103   :  { %991 = vmatpush3.bf16.msra.mxu1 %v990_v60  ;;  %p1015_p0 = scmp.ne.s32.totalorder %s652_s6, %s1014_s7  ;;  %p1020_p2 = scmp.lt.s32.totalorder %s1014_s7, %s1014_s7 }
 0x104   :  { %992 = vmatprep.subr.bf16.mxu1 %v1039_v45 }
 0x105   :  { %p1021_p3 = por %p1020_p2, %p1019_p1 }
 0x107   :  { %994 = vmatpush3.bf16.msra.mxu1 %v993_v63  ;;  %p1022_p4 = pnand %p1021_p3, %p1015_p0 }
 0x108   :  { %995 = vmatprep.subr.bf16.mxu1 %v1039_v45 }
 0x10b   :  { %997 = vmatpush3.bf16.msra.mxu1 %v996_v2 }
 0x10c   :  { %998 = vmatprep.subr.bf16.mxu1 %v1039_v45 }
 0x10f   :  { %1000 = vmatpush3.bf16.msra.mxu1 %v999_v4 }
 0x110   :  { %1001 = vmatprep.subr.bf16.mxu1 %v1039_v45 }
 0x113   :  { %1003 = vmatpush3.bf16.msra.mxu1 %v1002_v8 }
 0x114   :  { %1004 = vmatprep.subr.bf16.mxu1 %v1039_v45 }
 0x117   :  { %1006 = vmatpush3.bf16.msra.mxu1 %v1005_v12  ;;  %v337_v16 = vpop.f32.mrb[2].mxu0 }
 0x118   :  { %v338_v18 = vadd.f32 %v337_v16, %v123_v13  ;;  %v798_v19 = vpop.f32.mrb[3].mxu0  ;;  %1007 = vmatprep.subr.bf16.mxu1 %v1039_v45 }
 0x11a   :  { %v345_v20 = vmax.f32 %v338_v18, 0.0 }
 0x11b   :  { %1009 = vmatpush3.bf16.msra.mxu1 %v1008_v17 }
 0x11e   :  { %832 = vmatmul.mubr.f32.vlgmr.msra.gmra.mrb[4].mxu1 %v345_v20 }
 0x1d1   :  { %v709_v21 = vpop.f32.mrb[2].mxu1 }
 0x1d2   :  { %v710_v23 = vpop.f32.mrb[3].mxu1  ;;  %v744_v24 = vpop.f32.mrb[4].mxu0 }
 0x1d3   :  { %v711_v25 = vadd.f32 %v710_v23, %v709_v21  ;;  %v745_v26 = vpop.f32.mrb[5].mxu0 }
 0x1d4   :  { %v746_v27 = vadd.f32 %v745_v26, %v744_v24 }
 0x1d5   :  { %v500_v28 = vadd.f32 %v711_v25, %v659_v22 }
 0x1d7   :  { %v570_v29 = vadd.f32 %v746_v27, %v500_v28 }
 0x1f1   :  { %v639_v30 = vpop.f32.mrb[4].mxu1 }
 0x1f2   :  { %v640_v45 = vadd.f32 %v639_v30, %v570_v29  ;;  %v833_v31 = vpop.f32.mrb[5].mxu1 }
 0x1f4   :  { %644 = vst.msk [vmem:[#allocation2] sm:$0xff] %vm643_vm1, %v640_v45 }
 0x1f5   :  { %1025 = shalt.err (!%p1022_p4)
}
 0x1f6   :  { %s1026_s9 = scalar_lea.hbm %s1605_s5, 128 }
 0x1f7   :  { %p1027_p5 = scmp.ne.s32.totalorder %s1605_s5, %s1026_s9  ;;  %p1030_p6 = scmp.lt.u32.totalorder %s1026_s9, %s1605_s5 }
 0x1f9   :  { %p1032_p7 = pnand %p1030_p6, %p1027_p5 }
 0x1fb   :  { %1035 = shalt.err (!%p1032_p7)
}
 0x1fc   :  { %654 = dma.vmem_to_hbm [thread:$0]  %s652_s6, 128, %s1605_s5, [#allocation3]  }
 0x1fd   :  { %1036 = dma.done.wait [#allocation3], 128  }
 0x1fe   :  { %1037 = vsyncadd [#allocation3], 4294967168 }
 0x1ff   :  { %658 = vsyncpa [#allocation3], 1 }

</bundles_post_ra>
